<compile_context>
chip_gen: v7x
topology: tpu7x:2x2x1
jax: 0.10.0
libtpu: 0.0.40
codegen_flags: <defaults>
</compile_context>

<pallas_src>
import jax
import jax.numpy as jnp
from jax.experimental import pallas as pl
from jax.experimental.pallas import tpu as pltpu

N_CLASSES = 6
N_FEA = 16            # must be even (pool halves it)
CONV_CH = 20
HIDDEN = 120
BATCH = 8

F2 = N_FEA // 2                  # 8 pooled features
FLAT = CONV_CH * F2              # 160 (channel-major flatten width)
HIDDEN_P = 128                   # fc1 width padded to a full lane tile
OUT_P = 128                      # fc2 width padded to a full lane tile

# 128-aligned offsets inside the packed small-parameter vector (all f32 biases).
OFF_CB = 0                       # (FLAT,)     conv bias, expanded per channel
OFF_B1 = 256                     # (HIDDEN_P,) fc1 bias (zero padded)
OFF_B2 = 384                     # (OUT_P,)    fc2 bias (zero padded)
PACK_W = 512

MAX_BLOCK_N = 1024               # per-step rows; safe for v5e default scoped VMEM
SUBLANE = 16                     # bf16 sublane packing granule


def cnn_kernel(x_ref, ws_ref, w1_ref, w2_ref, p_ref, out_ref):
    # x_ref : (Bn, 16)  bf16   [xmax(8) | xmin(8)] per row
    # ws_ref: (16, FLAT) bf16  selection-scale matrix S (conv weight + sign select)
    # w1_ref: (FLAT, HIDDEN_P) bf16  fc1 weight (transposed, zero padded)
    # w2_ref: (HIDDEN_P, OUT_P) bf16 fc2 weight (transposed, zero padded)
    # p_ref : (1, PACK_W) f32  packed [cb_exp | b1 | b2]
    # out_ref: (Bn, OUT_P) bf16
    cb = p_ref[:, OFF_CB:OFF_CB + FLAT]            # (1, FLAT)
    b1 = p_ref[:, OFF_B1:OFF_B1 + HIDDEN_P]        # (1, HIDDEN_P)
    b2 = p_ref[:, OFF_B2:OFF_B2 + OUT_P]           # (1, OUT_P)

    # conv1x1 + ReLU + MaxPool(1,2) + channel-major flatten as one small MXU matmul.
    pre = jnp.dot(x_ref[...], ws_ref[...], preferred_element_type=jnp.float32) + cb
    flat = jnp.maximum(pre, 0.0)                   # (Bn, FLAT) f32

    # fc1 + sigmoid (sigmoid lowers to EUP exp/recip; f32 path works on v5e too).
    z1 = jnp.dot(flat.astype(jnp.bfloat16), w1_ref[...],
                 preferred_element_type=jnp.float32) + b1
    z1 = jax.nn.sigmoid(z1)                        # (Bn, HIDDEN_P); padded cols = 0.5

    # TODO(synk): nn.Dropout(0.5) is identity in eval mode; training-mode dropout
    # would build the mask with pltpu.prng_seed / pltpu.prng_random_bits.

    # fc2: padded rows of w2 are zero, so the 0.5 pad columns of z1 contribute 0;
    # padded output lanes are exactly 0 and are sliced off in the wrapper.
    out = jnp.dot(z1.astype(jnp.bfloat16), w2_ref[...],
                  preferred_element_type=jnp.float32) + b2
    out_ref[...] = out.astype(out_ref.dtype)


def prepare_params(params):
    """One-time conversion of PyTorch-layout params into kernel layout (hoisted)."""
    cw, cb, w1, b1, w2, b2 = params
    cw32 = cw.astype(jnp.float32)
    cb32 = cb.astype(jnp.float32)

    # Selection-scale matrix S (16, FLAT): column c*F2+f picks xmax[f] scaled by cw[c]
    # when cw[c] >= 0, else xmin[f] scaled by cw[c] (row F2+f).  cw == 0 -> either (0).
    f_idx = jnp.arange(F2)
    cols = (jnp.arange(CONV_CH)[:, None] * F2 + f_idx[None, :]).reshape(-1)
    rows = jnp.where(cw32[:, None] >= 0.0, f_idx[None, :], f_idx[None, :] + F2).reshape(-1)
    vals = jnp.broadcast_to(cw32[:, None], (CONV_CH, F2)).reshape(-1)
    sel = jnp.zeros((N_FEA, FLAT), jnp.float32).at[rows, cols].set(vals)

    cb_exp = jnp.repeat(cb32, F2)                                  # channel-major expand
    packed = jnp.zeros((1, PACK_W), jnp.float32)
    packed = packed.at[0, OFF_CB:OFF_CB + FLAT].set(cb_exp)
    packed = packed.at[0, OFF_B1:OFF_B1 + HIDDEN].set(b1.astype(jnp.float32))
    packed = packed.at[0, OFF_B2:OFF_B2 + N_CLASSES].set(b2.astype(jnp.float32))

    w1t = jnp.zeros((FLAT, HIDDEN_P), jnp.float32).at[:, :HIDDEN].set(
        w1.T.astype(jnp.float32))
    w2t = jnp.zeros((HIDDEN_P, OUT_P), jnp.float32).at[:HIDDEN, :N_CLASSES].set(
        w2.T.astype(jnp.float32))

    # Streamed/MXU tensors in bf16 (f32 accumulation in-kernel); biases stay f32.
    return (packed,
            sel.astype(jnp.bfloat16),
            w1t.astype(jnp.bfloat16),
            w2t.astype(jnp.bfloat16))


def _round_up(a, b):
    return (a + b - 1) // b * b


def _choose_blocking(n):
    """block_n, num_steps: >=2 steps for v7x megacore, cap 1024, minimal padding."""
    if n <= SUBLANE:
        return SUBLANE, 1
    num_steps = max(2, _round_up(n, MAX_BLOCK_N) // MAX_BLOCK_N)
    block_n = _round_up(-(-n // num_steps), SUBLANE)
    return block_n, num_steps


@jax.jit
def cnn_forward(x_nchw, kparams):
    """x_nchw: (N, 1, 1, n_fea) float32 -> logits (N, n_classes) float32."""
    packed, sel, w1t, w2t = kparams
    n = x_nchw.shape[0]
    x2d = x_nchw.reshape(n, N_FEA).astype(jnp.float32)

    # De-interleave + pool halves in plain JAX (tiny, XLA fuses into one fusion);
    # the kernel reads one compact lane-contiguous (n, 16) bf16 tile per row.
    # TODO(synk): for the pure batch-8 latency case this could be folded into the
    # kernel (in-kernel roll/strided slice over 16 lanes) if xprof shows unfused HLOs.
    x_even = x2d[:, 0::2]
    x_odd = x2d[:, 1::2]
    x16 = jnp.concatenate(
        [jnp.maximum(x_even, x_odd), jnp.minimum(x_even, x_odd)],
        axis=-1).astype(jnp.bfloat16)                              # (n, 16)

    block_n, num_steps = _choose_blocking(n)
    n_pad = block_n * num_steps
    if n_pad != n:
        x16 = jnp.pad(x16, ((0, n_pad - n), (0, 0)))

    # Weight blocks use constant index_maps so they are DMA'd once and stay
    # VMEM-resident (~0.1 MiB); double-buffering them is harmless at this size
    # (could be pipeline_mode=pl.Buffered(1) if VMEM ever tightens on v7x).
    out = pl.pallas_call(
        cnn_kernel,
        out_shape=jax.ShapeDtypeStruct((n_pad, OUT_P), jnp.bfloat16),
        grid=(num_steps,),
        in_specs=[
            pl.BlockSpec((block_n, N_FEA), lambda i: (i, 0)),      # streamed input
            pl.BlockSpec((N_FEA, FLAT), lambda i: (0, 0)),         # VMEM-resident
            pl.BlockSpec((FLAT, HIDDEN_P), lambda i: (0, 0)),      # VMEM-resident
            pl.BlockSpec((HIDDEN_P, OUT_P), lambda i: (0, 0)),     # VMEM-resident
            pl.BlockSpec((1, PACK_W), lambda i: (0, 0)),           # VMEM-resident
        ],
        out_specs=pl.BlockSpec((block_n, OUT_P), lambda i: (i, 0)),
        compiler_params=pltpu.CompilerParams(
            dimension_semantics=("parallel",)),
    )(x16, sel, w1t, w2t, packed)
    return out[:n, :N_CLASSES].astype(jnp.float32)


def init_params(key):
    """Deterministic parameter init with shapes matching the PyTorch module."""
    flat_dim = N_FEA // 2 * CONV_CH
    k = jax.random.split(key, 6)
    cw = 0.1 * jax.random.normal(k[0], (CONV_CH,), jnp.float32)            # conv1.weight (20,1,1,1) squeezed
    cb = 0.1 * jax.random.normal(k[1], (CONV_CH,), jnp.float32)            # conv1.bias
    w1 = 0.05 * jax.random.normal(k[2], (HIDDEN, flat_dim), jnp.float32)   # fc1.weight (120, flat)
    b1 = 0.05 * jax.random.normal(k[3], (HIDDEN,), jnp.float32)            # fc1.bias
    w2 = 0.05 * jax.random.normal(k[4], (N_CLASSES, HIDDEN), jnp.float32)  # fc2.weight (6, 120)
    b2 = 0.05 * jax.random.normal(k[5], (N_CLASSES,), jnp.float32)         # fc2.bias
    return cw, cb, w1, b1, w2, b2


def reference_forward(x_nchw, params):
    """Pure-JAX f32 reference of the PyTorch forward (eval mode)."""
    cw, cb, w1, b1, w2, b2 = params
    x = x_nchw.reshape(x_nchw.shape[0], -1)                         # (N, F)
    h = jnp.maximum(x[:, None, :] * cw[None, :, None] + cb[None, :, None], 0.0)
    hp = jnp.maximum(h[:, :, 0::2], h[:, :, 1::2])                  # (N, C, F//2)
    flat = hp.reshape(x.shape[0], -1)
    z1 = jax.nn.sigmoid(flat @ w1.T + b1)
    return z1 @ w2.T + b2


if __name__ == "__main__":
    key = jax.random.PRNGKey(0)
    kx, kp = jax.random.split(key)
    x = jax.random.normal(kx, (BATCH, 1, 1, N_FEA), jnp.float32)    # NCHW like PyTorch
    params = init_params(kp)
    kparams = prepare_params(params)                                # one-time layout conversion

    out = cnn_forward(x, kparams)
    out = jax.block_until_ready(out)

    ref = reference_forward(x, params)
    assert out.shape == (BATCH, N_CLASSES)
    # bf16 streamed tensors -> looser tolerance vs. the pure-f32 reference.
    assert jnp.allclose(out, ref, atol=2e-2, rtol=2e-2), "mismatch vs reference"
    print("KERNEL_OK")
</pallas_src>

<mosaic_0001>
module attributes {stable_mosaic.version = 11 : i64} {
  func.func @cnn_kernel(%arg0: i32, %arg1: memref<16x16xbf16, #tpu.memory_space<vmem>>, %arg2: memref<16x160xbf16, #tpu.memory_space<vmem>>, %arg3: memref<160x128xbf16, #tpu.memory_space<vmem>>, %arg4: memref<128x128xbf16, #tpu.memory_space<vmem>>, %arg5: memref<1x512xf32, #tpu.memory_space<vmem>>, %arg6: memref<16x128xbf16, #tpu.memory_space<vmem>>) attributes {dimension_semantics = [#tpu.dimension_semantics<parallel>], iteration_bounds = array<i64: 1>, scalar_prefetch = 0 : i64, scratch_operands = 0 : i64, tpu.core_type = #tpu.core_type<tc>, window_params = [{transform_indices = @transform_0, window_bounds = array<i64: 16, 16>}, {pipeline_mode = #tpu.pipeline_mode<synchronous>, transform_indices = @transform_1, window_bounds = array<i64: 16, 160>}, {pipeline_mode = #tpu.pipeline_mode<synchronous>, transform_indices = @transform_2, window_bounds = array<i64: 160, 128>}, {pipeline_mode = #tpu.pipeline_mode<synchronous>, transform_indices = @transform_3, window_bounds = array<i64: 128, 128>}, {pipeline_mode = #tpu.pipeline_mode<synchronous>, transform_indices = @transform_4, window_bounds = array<i64: 1, 512>}, {transform_indices = @transform_5, window_bounds = array<i64: 16, 128>}]} {
    %c0 = arith.constant 0 : index
    %c0_0 = arith.constant 0 : index
    %0 = vector.load %arg5[%c0, %c0_0] : memref<1x512xf32, #tpu.memory_space<vmem>>, vector<1x160xf32>
    %c0_1 = arith.constant 0 : index
    %c256 = arith.constant 256 : index
    %1 = vector.load %arg5[%c0_1, %c256] : memref<1x512xf32, #tpu.memory_space<vmem>>, vector<1x128xf32>
    %c0_2 = arith.constant 0 : index
    %c384 = arith.constant 384 : index
    %2 = vector.load %arg5[%c0_2, %c384] : memref<1x512xf32, #tpu.memory_space<vmem>>, vector<1x128xf32>
    %c0_3 = arith.constant 0 : index
    %c0_4 = arith.constant 0 : index
    %3 = vector.load %arg1[%c0_3, %c0_4] : memref<16x16xbf16, #tpu.memory_space<vmem>>, vector<16x16xbf16>
    %c0_5 = arith.constant 0 : index
    %c0_6 = arith.constant 0 : index
    %4 = vector.load %arg2[%c0_5, %c0_6] : memref<16x160xbf16, #tpu.memory_space<vmem>>, vector<16x160xbf16>
    %cst = arith.constant dense<0.000000e+00> : vector<16x160xf32>
    %5 = tpu.matmul %3, %4, %cst {dimension_numbers = #tpu.dot_dimension_numbers<[1], [0], [0], [1], [0, 0, 1, 1], [], []>} : vector<16x16xbf16>, vector<16x160xbf16>, vector<16x160xf32> -> vector<16x160xf32>
    %6 = vector.broadcast %0 : vector<1x160xf32> to vector<16x160xf32>
    %7 = arith.addf %5, %6 : vector<16x160xf32>
    %cst_7 = arith.constant 0.000000e+00 : f32
    %8 = vector.broadcast %cst_7 : f32 to vector<16x160xf32>
    %9 = arith.maximumf %7, %8 : vector<16x160xf32>
    %10 = arith.truncf %9 : vector<16x160xf32> to vector<16x160xbf16>
    %c0_8 = arith.constant 0 : index
    %c0_9 = arith.constant 0 : index
    %11 = vector.load %arg3[%c0_8, %c0_9] : memref<160x128xbf16, #tpu.memory_space<vmem>>, vector<160x128xbf16>
    %cst_10 = arith.constant dense<0.000000e+00> : vector<16x128xf32>
    %12 = tpu.matmul %10, %11, %cst_10 {dimension_numbers = #tpu.dot_dimension_numbers<[1], [0], [0], [1], [0, 0, 1, 1], [], []>} : vector<16x160xbf16>, vector<160x128xbf16>, vector<16x128xf32> -> vector<16x128xf32>
    %13 = vector.broadcast %1 : vector<1x128xf32> to vector<16x128xf32>
    %14 = arith.addf %12, %13 : vector<16x128xf32>
    %15 = arith.negf %14 : vector<16x128xf32>
    %16 = math.exp %15 : vector<16x128xf32>
    %cst_11 = arith.constant 1.000000e+00 : f32
    %17 = vector.broadcast %cst_11 : f32 to vector<16x128xf32>
    %18 = arith.addf %17, %16 : vector<16x128xf32>
    %19 = arith.divf %17, %18 : vector<16x128xf32>
    %20 = arith.truncf %19 : vector<16x128xf32> to vector<16x128xbf16>
    %c0_12 = arith.constant 0 : index
    %c0_13 = arith.constant 0 : index
    %21 = vector.load %arg4[%c0_12, %c0_13] : memref<128x128xbf16, #tpu.memory_space<vmem>>, vector<128x128xbf16>
    %cst_14 = arith.constant dense<0.000000e+00> : vector<16x128xf32>
    %22 = tpu.matmul %20, %21, %cst_14 {dimension_numbers = #tpu.dot_dimension_numbers<[1], [0], [0], [1], [0, 0, 1, 1], [], []>} : vector<16x128xbf16>, vector<128x128xbf16>, vector<16x128xf32> -> vector<16x128xf32>
    %23 = vector.broadcast %2 : vector<1x128xf32> to vector<16x128xf32>
    %24 = arith.addf %22, %23 : vector<16x128xf32>
    %25 = arith.truncf %24 : vector<16x128xf32> to vector<16x128xbf16>
    %c0_15 = arith.constant 0 : index
    %c0_16 = arith.constant 0 : index
    %26 = vector.load %arg6[%c0_15, %c0_16] : memref<16x128xbf16, #tpu.memory_space<vmem>>, vector<16x128xbf16>
    tpu.vector_store %arg6[%c0_15, %c0_16], %25 {strides = array<i32>} : memref<16x128xbf16, #tpu.memory_space<vmem>>, vector<16x128xbf16>,
    return
  }
  func.func @transform_0(%arg0: i32) -> (i32, i32) {
    %c0_i32 = arith.constant 0 : i32
    %c0_i32_0 = arith.constant 0 : i32
    return %arg0, %c0_i32 : i32, i32
  }
  func.func @transform_1(%arg0: i32) -> (i32, i32) {
    %c0_i32 = arith.constant 0 : i32
    %c0_i32_0 = arith.constant 0 : i32
    %c0_i32_1 = arith.constant 0 : i32
    return %c0_i32, %c0_i32_0 : i32, i32
  }
  func.func @transform_2(%arg0: i32) -> (i32, i32) {
    %c0_i32 = arith.constant 0 : i32
    %c0_i32_0 = arith.constant 0 : i32
    %c0_i32_1 = arith.constant 0 : i32
    return %c0_i32, %c0_i32_0 : i32, i32
  }
  func.func @transform_3(%arg0: i32) -> (i32, i32) {
    %c0_i32 = arith.constant 0 : i32
    %c0_i32_0 = arith.constant 0 : i32
    %c0_i32_1 = arith.constant 0 : i32
    return %c0_i32, %c0_i32_0 : i32, i32
  }
  func.func @transform_4(%arg0: i32) -> (i32, i32) {
    %c0_i32 = arith.constant 0 : i32
    %c0_i32_0 = arith.constant 0 : i32
    %c0_i32_1 = arith.constant 0 : i32
    return %c0_i32, %c0_i32_0 : i32, i32
  }
  func.func @transform_5(%arg0: i32) -> (i32, i32) {
    %c0_i32 = arith.constant 0 : i32
    %c0_i32_0 = arith.constant 0 : i32
    return %arg0, %c0_i32 : i32, i32
  }
}

</mosaic_0001>

<bundles_post_ra>
// kernel: cnn_forward.1
= control target key start
LH: loop header
LB: loop body
LE: loop exit
PB: predicated region body
PF: predicated region fallthrough
CT: control target
= control target key end

     0   :  { %10 = vsyncpa [#allocation3], 0  ;;  %s660_s0 = inlined_call_operand.vmem [shape: bf16[16,16], index: 0, kind: input, shape index: {}]   ;;  %s661_s1 = inlined_call_operand.hbm [shape: bf16[16,160], index: 1, kind: input, shape index: {}]   ;;  %s662_s2 = inlined_call_operand.hbm [shape: bf16[160,128], index: 2, kind: input, shape index: {}]   ;;  %s663_s3 = inlined_call_operand.vmem [shape: bf16[128,128], index: 3, kind: input, shape index: {}]   ;;  %s664_s4 = inlined_call_operand.vmem [shape: f32[1,512], index: 4, kind: input, shape index: {}]   ;;  %s665_s5 = inlined_call_operand.vmem [shape: bf16[16,128], index: 5, kind: output, shape index: {}]  }
   0x1   :  { %11 = vsyncpa [#allocation5], 0  ;;  %s558_s18 = smov [#allocation2]   ;;  %s510_s22 = scalar_lea.hbm %s661_s1, 256 }
   0x2   :  { %s19_s19 = sshll.u32 %s558_s18, 4  ;;  %p511_p0 = scmp.ne.s32.totalorder %s661_s1, %s510_s22  ;;  %s20_s19 = int_to_ptr.vmem [resolvable:$true] %s19_s19 }
   0x3   :  { %p514_p1 = scmp.lt.u32.totalorder %s510_s22, %s661_s1 }
   0x5   :  { %p516_p2 = pnand %p514_p1, %p511_p0 }
   0x7   :  { %519 = shalt.err (!%p516_p2)
}
   0x8   :  { %s520_s27 = scalar_lea.vmem %s20_s19, 256  ;;  %p525_p4 = scmp.lt.s32.totalorder %s20_s19, %s20_s19 }
   0x9   :  { %p521_p3 = scmp.ne.s32.totalorder %s20_s19, %s520_s27  ;;  %p526_p5 = scmp.lt.s32.totalorder %s520_s27, %s520_s27 }
   0xb   :  { %p527_p6 = por %p526_p5, %p525_p4 }
   0xd   :  { %p528_p7 = pnand %p527_p6, %p521_p3 }
   0xf   :  { %531 = shalt.err (!%p528_p7)
}
  0x10   :  { %s559_s28 = smov 128   ;;  %s560_s29 = smov 8  }
  0x11   :  { %25 = dma.hbm_to_vmem [thread:$0]  %s661_s1, 256, %s20_s19, [#allocation3], %s559_s28, %s559_s28, %s560_s29  }
  0x12   :  { %s561_s7 = smov [#allocation4]   ;;  %s532_s11 = scalar_lea.hbm %s662_s2, 1280 }
  0x13   :  { %s31_s8 = sshll.u32 %s561_s7, 4  ;;  %p533_p8 = scmp.ne.s32.totalorder %s662_s2, %s532_s11  ;;  %s32_s8 = int_to_ptr.vmem [resolvable:$true] %s31_s8 }
  0x14   :  { %p536_p9 = scmp.lt.u32.totalorder %s532_s11, %s662_s2 }
  0x16   :  { %p538_p10 = pnand %p536_p9, %p533_p8 }
  0x18   :  { %541 = shalt.err (!%p538_p10)
}
  0x19   :  { %s542_s16 = scalar_lea.vmem %s32_s8, 1280  ;;  %p547_p12 = scmp.lt.s32.totalorder %s32_s8, %s32_s8 }
  0x1a   :  { %p543_p11 = scmp.ne.s32.totalorder %s32_s8, %s542_s16  ;;  %p548_p13 = scmp.lt.s32.totalorder %s542_s16, %s542_s16 }
  0x1c   :  { %p549_p0 = por %p548_p13, %p547_p12 }
  0x1e   :  { %p550_p1 = pnand %p549_p0, %p543_p11 }
  0x20   :  { %553 = shalt.err (!%p550_p1)
}
  0x21   :  { %s562_s1 = smov 64   ;;  %s563_s17 = smov 4  }
  0x22   :  { %37 = dma.hbm_to_vmem [thread:$0]  %s662_s2, 1280, %s32_s8, [#allocation5], %s562_s1, %s562_s1, %s563_s17  }
  0x23   :  { %554 = dma.done.wait [#allocation3], 256  }
  0x24   :  { %555 = vsyncadd [#allocation3], 4294967040 }
  0x25   :  { %556 = dma.done.wait [#allocation5], 1280  }
  0x26   :  { %557 = vsyncadd [#allocation5], 4294966016  ;;  %v564_v0 = vmov 0   ;;  %v480_v1 = vld [vmem:[#allocation2 + $0x4] ss:$8 sps:$4 sm:$0xff]   ;;  %vm82_vm0 = vcmask 130048   ;;  %v57_v14 = vlaneseq }
  0x27   :  { %118 = vmatprep.mubr.bf16.mxu0 %v564_v0  ;;  %225 = vmatprep.subr.bf16.mxu1 %v564_v0  ;;  %v482_v2 = vld [vmem:[#allocation2] ss:$8 sps:$4 sm:$0xff]   ;;  %v484_v4 = vld [vmem:[#allocation4] sm:$0xff]   ;;  %v485_v5 = vld [vmem:[#allocation4 + $0x8] sm:$0xff]   ;;  %vm221_vm1 = vcmask 261120   ;;  %v565_v36 = vmov 0.0  }
  0x28   :  { %86 = vmatprep.subr.bf16.mxu0 %v480_v1  ;;  %v483_v3 = vld [vmem:[%s660_s0] sm:$0xff]   ;;  %226 = vmatpush1.bf16.msra.mxu1 %v484_v4  ;;  %v487_v7 = vld [vmem:[#allocation4 + $0x18] sm:$0xff]   ;;  %v488_v8 = vld [vmem:[#allocation4 + $0x20] sm:$0xff]   ;;  %v58_v15 = vshrl.u32 %v57_v14, 7  ;;  %vm566_vm2 = vmmov 0  }
  0x29   :  { %87 = vmatpush1.bf16.msra.mxu0 %v482_v2  ;;  %227 = vmatprep.subr.bf16.mxu1 %v564_v0  ;;  %v486_v6 = vld [vmem:[#allocation4 + $0x10] sm:$0xff]   ;;  %v489_v9 = vld [vmem:[#allocation4 + $0x28] sm:$0xff]   ;;  %v491_v11 = vld [vmem:[#allocation4 + $0x38] sm:$0xff]  }
  0x2a   :  { %v490_v10 = vld [vmem:[#allocation4 + $0x30] sm:$0xff]   ;;  %v492_v12 = vld [vmem:[#allocation4 + $0x40] sm:$0xff]   ;;  %v493_v13 = vld [vmem:[#allocation4 + $0x48] sm:$0xff]   ;;  %v59_v16 = vsub.s32 0, %v58_v15  ;;  %v63_v18 = vsub.s32 1, %v58_v15  ;;  %451 = vmatprep.subr.bf16.mxu0 %v565_v36 }
  0x2b   :  { %v49_v17 = vld [vmem:[%s664_s4] sm:$0x3]  ;;  %v495_v37 = vld [vmem:[%s663_s3 + $0x8] sm:$0xff]   ;;  %v496_v38 = vld [vmem:[%s663_s3 + $0x10] sm:$0xff]  }
  0x2c   :  { %409 = vmatmul.mubr.msk.bf16.vlgmr.msra.gmra.mrb[0].mxu0 %vm82_vm0, %v483_v3  ;;  %228 = vmatpush1.bf16.msra.mxu1 %v485_v5  ;;  %v60_v19 = vrot.slane %v49_v17, %v59_v16  ;;  %v64_v20 = vrot.slane %v49_v17, %v63_v18  ;;  %v494_v35 = vld [vmem:[%s663_s3] sm:$0xff]   ;;  %v497_v39 = vld [vmem:[%s663_s3 + $0x18] sm:$0xff]   ;;  %v499_v41 = vld [vmem:[%s663_s3 + $0x28] sm:$0xff]  }
  0x2d   :  { %229 = vmatprep.subr.bf16.mxu1 %v564_v0  ;;  %452 = vmatpush3.bf16.msra.mxu0 %v494_v35  ;;  %v498_v40 = vld [vmem:[%s663_s3 + $0x20] sm:$0xff]   ;;  %v500_v42 = vld [vmem:[%s663_s3 + $0x30] sm:$0xff]   ;;  %v501_v43 = vld [vmem:[%s663_s3 + $0x38] sm:$0xff]  }
  0x2e   :  { %453 = vmatprep.subr.bf16.mxu0 %v565_v36  ;;  %467 = vmatprep.mubr.msk.bf16.mxu0 %vm566_vm2, %v565_v36  ;;  %v410_v44 = vld [vmem:[%s664_s4 + $0x2] ss:$0 sm:$0xff]  ;;  %v424_v60 = vld [vmem:[%s664_s4 + $0x3] ss:$0 sm:$0xff] }
  0x30   :  { %230 = vmatpush1.bf16.msra.mxu1 %v486_v6 }
  0x31   :  { %231 = vmatprep.subr.bf16.mxu1 %v564_v0  ;;  %454 = vmatpush3.bf16.msra.mxu0 %v495_v37 }
  0x32   :  { %455 = vmatprep.subr.bf16.mxu0 %v565_v36 }
  0x34   :  { %232 = vmatpush1.bf16.msra.mxu1 %v487_v7 }
  0x35   :  { %233 = vmatprep.subr.bf16.mxu1 %v564_v0  ;;  %456 = vmatpush3.bf16.msra.mxu0 %v496_v38 }
  0x36   :  { %457 = vmatprep.subr.bf16.mxu0 %v565_v36 }
  0x38   :  { %234 = vmatpush1.bf16.msra.mxu1 %v488_v8 }
  0x39   :  { %235 = vmatprep.subr.bf16.mxu1 %v564_v0  ;;  %458 = vmatpush3.bf16.msra.mxu0 %v497_v39 }
  0x3a   :  { %459 = vmatprep.subr.bf16.mxu0 %v565_v36 }
  0x3c   :  { %236 = vmatpush1.bf16.msra.mxu1 %v489_v9 }
  0x3d   :  { %237 = vmatprep.subr.bf16.mxu1 %v564_v0  ;;  %460 = vmatpush3.bf16.msra.mxu0 %v498_v40 }
  0x3e   :  { %461 = vmatprep.subr.bf16.mxu0 %v565_v36 }
  0x40   :  { %238 = vmatpush1.bf16.msra.mxu1 %v490_v10 }
  0x41   :  { %239 = vmatprep.subr.bf16.mxu1 %v564_v0  ;;  %462 = vmatpush3.bf16.msra.mxu0 %v499_v41 }
  0x42   :  { %463 = vmatprep.subr.bf16.mxu0 %v565_v36 }
  0x44   :  { %240 = vmatpush1.bf16.msra.mxu1 %v491_v11 }
  0x45   :  { %241 = vmatprep.subr.bf16.mxu1 %v564_v0  ;;  %464 = vmatpush3.bf16.msra.mxu0 %v500_v42 }
  0x46   :  { %465 = vmatprep.subr.bf16.mxu0 %v565_v36 }
  0x48   :  { %242 = vmatpush1.bf16.msra.mxu1 %v492_v12 }
  0x49   :  { %243 = vmatprep.subr.bf16.mxu1 %v564_v0  ;;  %466 = vmatpush3.bf16.msra.mxu0 %v501_v43 }
  0x4c   :  { %244 = vmatpush1.bf16.msra.mxu1 %v493_v13 }
  0xff   :  { %v120_v21 = vpop.f32.mrb[0].mxu0 }
 0x100   :  { %v121_v22 = vadd.f32 %v120_v21, %v60_v19  ;;  %v122_v23 = vpop.f32.mrb[1].mxu0 }
 0x101   :  { %v123_v24 = vadd.f32 %v122_v23, %v64_v20  ;;  %v124_v25 = vpop.f32.mrb[2].mxu0 }
 0x102   :  { %v125_v26 = vadd.f32 %v124_v25, %v60_v19  ;;  %v126_v27 = vpop.f32.mrb[3].mxu0  ;;  %v129_v29 = vmax.f32 %v121_v22, 0.0 }
 0x103   :  { %v127_v28 = vadd.f32 %v126_v27, %v64_v20  ;;  %v130_v31 = vmax.f32 %v123_v24, 0.0 }
 0x104   :  { %v131_v30 = vmax.f32 %v125_v26, 0.0 }
 0x105   :  { %v132_v32 = vmax.f32 %v127_v28, 0.0 }
 0x106   :  { %v133_v33 = vpack.c.bf16 %v131_v30, %v129_v29 }
 0x107   :  { %v134_v34 = vpack.c.bf16 %v132_v32, %v130_v31 }
 0x109   :  { %421 = vmatprep.mubr.msk.bf16.mxu1 %vm221_vm1, %v134_v34 }
 0x10a   :  { %258 = vmatmul.mubr.bf16.vlgmr.msra.gmra.mrb[0].mxu1 %v133_v33 }
 0x1dd   :  { %v259_v45 = vpop.f32.mrb[0].mxu1 }
 0x1de   :  { %v260_v46 = vadd.f32 %v410_v44, %v259_v45  ;;  %v261_v47 = vpop.f32.mrb[1].mxu1 }
 0x1df   :  { %v262_v48 = vpop.f32.mrb[2].mxu1 }
 0x1e0   :  { %v422_v49 = vmul.f32 -1.442695, %v260_v46  ;;  %v263_v50 = vadd.f32 %v410_v44, %v262_v48  ;;  %v264_v51 = vpop.f32.mrb[3].mxu1 }
 0x1e2   :  { %502 = vpow2.f32 %v422_v49  ;;  %v423_v52 = vmul.f32 -1.442695, %v263_v50 }
 0x1e4   :  { %504 = vpow2.f32 %v423_v52 }
 0x1ec   :  { %v503_v53 = vpop.eup %502 }
 0x1ed   :  { %v272_v54 = vadd.f32 1.0, %v503_v53 }
 0x1ee   :  { %v505_v55 = vpop.eup %504 }
 0x1ef   :  { %v273_v56 = vadd.f32 1.0, %v505_v55  ;;  %506 = vrcp.f32 %v272_v54 }
 0x1f1   :  { %508 = vrcp.f32 %v273_v56 }
 0x1f9   :  { %v507_v57 = vpop.eup %506 }
 0x1fb   :  { %v509_v58 = vpop.eup %508 }
 0x1fc   :  { %v278_v59 = vpack.c.bf16 %v509_v58, %v507_v57 }
 0x1fe   :  { %468 = vmatmul.mubr.bf16.vlgmr.msra.gmra.mrb[4].mxu0 %v278_v59 }
 0x2d1   :  { %v383_v61 = vpop.f32.mrb[4].mxu0 }
 0x2d2   :  { %v469_v62 = vpop.f32.mrb[5].mxu0  ;;  %v384_v0 = vadd.f32 %v424_v60, %v383_v61 }
 0x2d3   :  { %v386_v63 = vpop.f32.mrb[6].mxu0 }
 0x2d4   :  { %v387_v1 = vadd.f32 %v424_v60, %v386_v63  ;;  %v470_v2 = vpop.f32.mrb[7].mxu0 }
 0x2d6   :  { %v440_v3 = vpack.c.bf16 %v387_v1, %v384_v0 }
 0x2d8   :  { %441 = vst [vmem:[%s665_s5] sm:$0xff] %v440_v3  }
 0x2d9   :  { %404 = vsyncpa [#allocation3], 1 }
 0x2da   :  { %405 = vsyncpa [#allocation5], 1 }

</bundles_post_ra>
